<compile_context>
chip_gen: v6e
topology: v6e:2x2x1
jax: 0.10.0
libtpu: 0.0.40
codegen_flags: <defaults>
</compile_context>

<pallas_src>
import functools

import jax
import jax.numpy as jnp
from jax import lax
from jax.experimental import pallas as pl
from jax.experimental.pallas import tpu as pltpu


def _rcab_kernel(x_ref, w1_ref, b1_ref, wcomb_ref, bcomb_ref,
                 wc2_ref, bc2_ref, o_ref, *,
                 n_feat, chunk, num_chunks, use_bf16):
    """Fused RCAB forward on one (C, tile_hw) block of one image.

    Layout: channels on sublanes, pixels on lanes.
      x_ref     : (C, T)      input pixels for one image tile
      w1        : (C, C)      body conv1 1x1 weight (out, in)
      wcomb     : (C+Cm, C)   [w2 ; wc1 @ w2]  (conv2 + folded first CA conv)
      wc2       : (C, Cm)     CA second 1x1-conv weight
      b*        : (*, 1)      biases, broadcast over the lane (pixel) axis
      o_ref     : (C, T)      output pixels
    The block is processed in lane sub-chunks of `chunk` pixels so compute
    temporaries stay small while the DMA block stays large.
    """
    mm_dtype = jnp.bfloat16 if use_bf16 else jnp.float32

    # Weights loaded (and optionally down-cast) once per grid step.
    w1 = w1_ref[...].astype(mm_dtype)
    wcomb = wcomb_ref[...].astype(mm_dtype)
    wc2 = wc2_ref[...].astype(mm_dtype)
    b1 = b1_ref[...]
    bcomb = bcomb_ref[...]
    bc2 = bc2_ref[...]

    def body(i, carry):
        off = pl.multiple_of(i * chunk, 128)
        x = x_ref[:, pl.ds(off, chunk)]

        # conv1 (1x1) + ReLU                      -- MXU, lane-dense result
        h1 = jnp.dot(w1, x.astype(mm_dtype),
                     preferred_element_type=jnp.float32) + b1
        h1 = jnp.maximum(h1, 0.0)

        # conv2 + folded first CA conv in ONE matmul (shared RHS h1).
        r = jnp.dot(wcomb, h1.astype(mm_dtype),
                    preferred_element_type=jnp.float32) + bcomb
        h2 = r[:n_feat]                       # conv2 output
        a1 = jnp.maximum(r[n_feat:], 0.0)     # relu(wc1 @ h2 + bc1)

        # Second CA conv + sigmoid gate.
        z = jnp.dot(wc2, a1.astype(mm_dtype),
                    preferred_element_type=jnp.float32) + bc2
        if use_bf16:
            # EUP-routed exp + approx reciprocal (fast path only).
            gate = pl.reciprocal(1.0 + jnp.exp(-z), approx=True)
        else:
            gate = jax.nn.sigmoid(z)

        # res = h2 * gate ; out = res + x  (RCABlock residual add)
        o_ref[:, pl.ds(off, chunk)] = (h2 * gate + x).astype(o_ref.dtype)
        return carry

    lax.fori_loop(0, num_chunks, body, 0, unroll=True)


def rcab_forward(x_nchw, kparams, *, tile_hw_max=32768, chunk_hw=2048,
                 use_bf16=False, vmem_limit_bytes=48 << 20):
    """RCABlock forward. x_nchw: (N, C, H, W) float32. Returns (N, C, H, W)."""
    N, C, H, W = x_nchw.shape
    CmC = kparams["wcomb"].shape[0]       # C + Cm
    Cm = CmC - C
    HW = H * W

    # Free, contiguity-preserving reshape: (N, C, H, W) -> (N*C, HW).
    x2 = x_nchw.reshape(N * C, HW)

    # DMA block: as large as allowed, multiple of 128 lanes.
    tile_hw = min(tile_hw_max, -(-HW // 128) * 128)
    # Compute sub-chunk inside the block (keeps temporaries small).
    if tile_hw % chunk_hw == 0:
        chunk = chunk_hw
    else:
        chunk = tile_hw
    num_chunks = tile_hw // chunk

    HWp = -(-HW // tile_hw) * tile_hw
    if HWp != HW:
        x2 = jnp.pad(x2, ((0, 0), (0, HWp - HW)))

    grid = (N, HWp // tile_hw)

    # Weights/biases: full-array blocks with constant index maps (fetched once).
    const = lambda shape: pl.BlockSpec(shape, lambda n, t: (0, 0))

    kernel = functools.partial(
        _rcab_kernel, n_feat=C, chunk=chunk, num_chunks=num_chunks,
        use_bf16=use_bf16)

    out2 = pl.pallas_call(
        kernel,
        out_shape=jax.ShapeDtypeStruct((N * C, HWp), x2.dtype),
        grid_spec=pltpu.PrefetchScalarGridSpec(
            num_scalar_prefetch=0,
            grid=grid,
            in_specs=[
                pl.BlockSpec((C, tile_hw), lambda n, t: (n, t)),  # x tile
                const((C, C)),      # w1
                const((C, 1)),      # b1
                const((CmC, C)),    # wcomb = [w2 ; wc1 @ w2]
                const((CmC, 1)),    # bcomb = [b2 ; wc1 @ b2 + bc1]
                const((C, Cm)),     # wc2
                const((C, 1)),      # bc2
            ],
            out_specs=pl.BlockSpec((C, tile_hw), lambda n, t: (n, t)),
        ),
        compiler_params=pltpu.CompilerParams(
            dimension_semantics=("parallel", "parallel"),
            vmem_limit_bytes=vmem_limit_bytes),
    )(x2,
      kparams["w1"], kparams["b1"],
      kparams["wcomb"], kparams["bcomb"],
      kparams["wc2"], kparams["bc2"])

    if HWp != HW:
        out2 = out2[:, :HW]
    return out2.reshape(N, C, H, W)


def rcab_reference(x_nchw, params):
    """Pure-JAX reference (un-fused math, no Pallas) for verification."""
    N, C, H, W = x_nchw.shape
    x = x_nchw.reshape(N, C, H * W)
    h1 = jnp.maximum(jnp.einsum("oc,nct->not", params["w1"], x) + params["b1"], 0.0)
    h2 = jnp.einsum("oc,nct->not", params["w2"], h1) + params["b2"]
    a1 = jnp.maximum(jnp.einsum("mc,nct->nmt", params["wc1"], h2) + params["bc1"], 0.0)
    a2 = jax.nn.sigmoid(jnp.einsum("cm,nmt->nct", params["wc2"], a1) + params["bc2"])
    out = h2 * a2 + x
    return out.reshape(N, C, H, W)


def init_params(key, n_feat, reduction, kernel_size=1):
    """Deterministic synthetic parameters matching the module's shapes.

    Conv2d weights (out, in, 1, 1) are stored as (out, in) matrices; biases as
    (out, 1) columns (they broadcast over the lane/pixel axis in the kernel).
    """
    assert kernel_size == 1, "see TODO(synk): residual requires kernel_size=1"
    c_mid = n_feat // reduction
    k = jax.random.split(key, 8)

    std_body = (2.0 / (kernel_size * kernel_size * n_feat)) ** 0.5
    std_ca1 = (2.0 / (1 * 1 * c_mid)) ** 0.5
    std_ca2 = (2.0 / (1 * 1 * n_feat)) ** 0.5

    return {
        "w1": std_body * jax.random.normal(k[0], (n_feat, n_feat), jnp.float32),
        "b1": 0.01 * jax.random.normal(k[1], (n_feat, 1), jnp.float32),
        "w2": std_body * jax.random.normal(k[2], (n_feat, n_feat), jnp.float32),
        "b2": 0.01 * jax.random.normal(k[3], (n_feat, 1), jnp.float32),
        "wc1": std_ca1 * jax.random.normal(k[4], (c_mid, n_feat), jnp.float32),
        "bc1": 0.01 * jax.random.normal(k[5], (c_mid, 1), jnp.float32),
        "wc2": std_ca2 * jax.random.normal(k[6], (n_feat, c_mid), jnp.float32),
        "bc2": 0.01 * jax.random.normal(k[7], (n_feat, 1), jnp.float32),
    }


def prepare_params(p):
    """Host-side weight prep.

    Fold conv2 into the first CA matmul:
      a1 = relu(Wc1 @ (W2 @ h1 + b2) + bc1)
         = relu((Wc1 @ W2) @ h1 + (Wc1 @ b2 + bc1))
    then concatenate the two h1-consumers (conv2 and the folded CA conv) so
    the kernel computes them with a single matmul:
      wcomb = [W2 ; Wc1 @ W2]   (C+Cm, C)
      bcomb = [b2 ; Wc1 @ b2 + bc1]
    """
    wf = p["wc1"] @ p["w2"]
    bf = p["wc1"] @ p["b2"] + p["bc1"]
    return {
        "w1": p["w1"], "b1": p["b1"],
        "wcomb": jnp.concatenate([p["w2"], wf], axis=0),
        "bcomb": jnp.concatenate([p["b2"], bf], axis=0),
        "wc2": p["wc2"], "bc2": p["bc2"],
    }


if __name__ == "__main__":
    n_feat, reduction, kernel_size = 32, 4, 1
    N, H, W = 2, 16, 16

    key = jax.random.PRNGKey(0)
    k_x, k_p = jax.random.split(key)
    x = jax.random.normal(k_x, (N, n_feat, H, W), jnp.float32)
    params = init_params(k_p, n_feat, reduction, kernel_size)
    kparams = prepare_params(params)

    ref = rcab_reference(x, params)

    # Exact (f32) path: must match the un-fused reference tightly.
    out = jax.block_until_ready(rcab_forward(x, kparams))
    assert out.shape == x.shape
    assert jnp.allclose(out, ref, atol=1e-4, rtol=1e-4), "f32 mismatch vs reference"

    # Fast path: bf16 MXU operands, f32 accumulation/elementwise (opt-in).
    out_fast = jax.block_until_ready(rcab_forward(x, kparams, use_bf16=True))
    assert jnp.allclose(out_fast, ref, atol=1e-1, rtol=1e-1), "bf16 path diverged"

    print("KERNEL_OK")
</pallas_src>

<mosaic_0001>
module attributes {stable_mosaic.version = 11 : i64} {
  func.func @_rcab_kernel(%arg0: i32, %arg1: i32, %arg2: memref<32x256xf32, #tpu.memory_space<vmem>>, %arg3: memref<32x32xf32, #tpu.memory_space<vmem>>, %arg4: memref<32x1xf32, #tpu.memory_space<vmem>>, %arg5: memref<40x32xf32, #tpu.memory_space<vmem>>, %arg6: memref<40x1xf32, #tpu.memory_space<vmem>>, %arg7: memref<32x8xf32, #tpu.memory_space<vmem>>, %arg8: memref<32x1xf32, #tpu.memory_space<vmem>>, %arg9: memref<32x256xf32, #tpu.memory_space<vmem>>) attributes {dimension_semantics = [#tpu.dimension_semantics<parallel>, #tpu.dimension_semantics<parallel>], iteration_bounds = array<i64: 2, 1>, scalar_prefetch = 0 : i64, scratch_operands = 0 : i64, tpu.core_type = #tpu.core_type<tc>, window_params = [{transform_indices = @transform_0, window_bounds = array<i64: 32, 256>}, {pipeline_mode = #tpu.pipeline_mode<synchronous>, transform_indices = @transform_1, window_bounds = array<i64: 32, 32>}, {pipeline_mode = #tpu.pipeline_mode<synchronous>, transform_indices = @transform_2, window_bounds = array<i64: 32, 1>}, {pipeline_mode = #tpu.pipeline_mode<synchronous>, transform_indices = @transform_3, window_bounds = array<i64: 40, 32>}, {pipeline_mode = #tpu.pipeline_mode<synchronous>, transform_indices = @transform_4, window_bounds = array<i64: 40, 1>}, {pipeline_mode = #tpu.pipeline_mode<synchronous>, transform_indices = @transform_5, window_bounds = array<i64: 32, 8>}, {pipeline_mode = #tpu.pipeline_mode<synchronous>, transform_indices = @transform_6, window_bounds = array<i64: 32, 1>}, {transform_indices = @transform_7, window_bounds = array<i64: 32, 256>}]} {
    %c0 = arith.constant 0 : index
    %c0_0 = arith.constant 0 : index
    %0 = vector.load %arg3[%c0, %c0_0] : memref<32x32xf32, #tpu.memory_space<vmem>>, vector<32x32xf32>
    %c0_1 = arith.constant 0 : index
    %c0_2 = arith.constant 0 : index
    %1 = vector.load %arg5[%c0_1, %c0_2] : memref<40x32xf32, #tpu.memory_space<vmem>>, vector<40x32xf32>
    %c0_3 = arith.constant 0 : index
    %c0_4 = arith.constant 0 : index
    %2 = vector.load %arg7[%c0_3, %c0_4] : memref<32x8xf32, #tpu.memory_space<vmem>>, vector<32x8xf32>
    %c0_5 = arith.constant 0 : index
    %c0_6 = arith.constant 0 : index
    %3 = vector.load %arg4[%c0_5, %c0_6] : memref<32x1xf32, #tpu.memory_space<vmem>>, vector<32x1xf32>
    %c0_7 = arith.constant 0 : index
    %c0_8 = arith.constant 0 : index
    %4 = vector.load %arg6[%c0_7, %c0_8] : memref<40x1xf32, #tpu.memory_space<vmem>>, vector<40x1xf32>
    %c0_9 = arith.constant 0 : index
    %c0_10 = arith.constant 0 : index
    %5 = vector.load %arg8[%c0_9, %c0_10] : memref<32x1xf32, #tpu.memory_space<vmem>>, vector<32x1xf32>
    %c0_i32 = arith.constant 0 : i32
    %c256_i32 = arith.constant 256 : i32
    %6 = arith.muli %c0_i32, %c256_i32 : i32
    %7 = tpu.assume_multiple %6, 128 : i32
    %c0_11 = arith.constant 0 : index
    %8 = arith.index_cast %7 : i32 to index
    %9 = vector.load %arg2[%c0_11, %8] : memref<32x256xf32, #tpu.memory_space<vmem>>, vector<32x256xf32>
    %cst = arith.constant dense<0.000000e+00> : vector<32x256xf32>
    %10 = tpu.matmul %0, %9, %cst {dimension_numbers = #tpu.dot_dimension_numbers<[1], [0], [0], [1], [0, 0, 1, 1], [], []>} : vector<32x32xf32>, vector<32x256xf32>, vector<32x256xf32> -> vector<32x256xf32>
    %11 = vector.broadcast %3 : vector<32x1xf32> to vector<32x256xf32>
    %12 = arith.addf %10, %11 : vector<32x256xf32>
    %cst_12 = arith.constant 0.000000e+00 : f32
    %13 = vector.broadcast %cst_12 : f32 to vector<32x256xf32>
    %14 = arith.maximumf %12, %13 : vector<32x256xf32>
    %cst_13 = arith.constant dense<0.000000e+00> : vector<40x256xf32>
    %15 = tpu.matmul %1, %14, %cst_13 {dimension_numbers = #tpu.dot_dimension_numbers<[1], [0], [0], [1], [0, 0, 1, 1], [], []>} : vector<40x32xf32>, vector<32x256xf32>, vector<40x256xf32> -> vector<40x256xf32>
    %16 = vector.broadcast %4 : vector<40x1xf32> to vector<40x256xf32>
    %17 = arith.addf %15, %16 : vector<40x256xf32>
    %18 = vector.extract_strided_slice %17 {offsets = [0, 0], sizes = [32, 256], strides = [1, 1]} : vector<40x256xf32> to vector<32x256xf32>
    %19 = vector.extract_strided_slice %17 {offsets = [32, 0], sizes = [8, 256], strides = [1, 1]} : vector<40x256xf32> to vector<8x256xf32>
    %cst_14 = arith.constant 0.000000e+00 : f32
    %20 = vector.broadcast %cst_14 : f32 to vector<8x256xf32>
    %21 = arith.maximumf %19, %20 : vector<8x256xf32>
    %cst_15 = arith.constant dense<0.000000e+00> : vector<32x256xf32>
    %22 = tpu.matmul %2, %21, %cst_15 {dimension_numbers = #tpu.dot_dimension_numbers<[1], [0], [0], [1], [0, 0, 1, 1], [], []>} : vector<32x8xf32>, vector<8x256xf32>, vector<32x256xf32> -> vector<32x256xf32>
    %23 = vector.broadcast %5 : vector<32x1xf32> to vector<32x256xf32>
    %24 = arith.addf %22, %23 : vector<32x256xf32>
    %25 = arith.negf %24 : vector<32x256xf32>
    %26 = math.exp %25 : vector<32x256xf32>
    %cst_16 = arith.constant 1.000000e+00 : f32
    %27 = vector.broadcast %cst_16 : f32 to vector<32x256xf32>
    %28 = arith.addf %27, %26 : vector<32x256xf32>
    %29 = arith.divf %27, %28 : vector<32x256xf32>
    %30 = arith.mulf %18, %29 : vector<32x256xf32>
    %31 = arith.addf %30, %9 : vector<32x256xf32>
    %c0_17 = arith.constant 0 : index
    %32 = arith.index_cast %7 : i32 to index
    %33 = vector.load %arg9[%c0_17, %32] : memref<32x256xf32, #tpu.memory_space<vmem>>, vector<32x256xf32>
    tpu.vector_store %arg9[%c0_17, %32], %31 {strides = array<i32>} : memref<32x256xf32, #tpu.memory_space<vmem>>, vector<32x256xf32>,
    %c1_i32 = arith.constant 1 : i32
    return
  }
  func.func @transform_0(%arg0: i32, %arg1: i32) -> (i32, i32) {
    %c0_i32 = arith.constant 0 : i32
    return %arg0, %arg1 : i32, i32
  }
  func.func @transform_1(%arg0: i32, %arg1: i32) -> (i32, i32) {
    %c0_i32 = arith.constant 0 : i32
    %c0_i32_0 = arith.constant 0 : i32
    %c0_i32_1 = arith.constant 0 : i32
    return %c0_i32, %c0_i32_0 : i32, i32
  }
  func.func @transform_2(%arg0: i32, %arg1: i32) -> (i32, i32) {
    %c0_i32 = arith.constant 0 : i32
    %c0_i32_0 = arith.constant 0 : i32
    %c0_i32_1 = arith.constant 0 : i32
    return %c0_i32, %c0_i32_0 : i32, i32
  }
  func.func @transform_3(%arg0: i32, %arg1: i32) -> (i32, i32) {
    %c0_i32 = arith.constant 0 : i32
    %c0_i32_0 = arith.constant 0 : i32
    %c0_i32_1 = arith.constant 0 : i32
    return %c0_i32, %c0_i32_0 : i32, i32
  }
  func.func @transform_4(%arg0: i32, %arg1: i32) -> (i32, i32) {
    %c0_i32 = arith.constant 0 : i32
    %c0_i32_0 = arith.constant 0 : i32
    %c0_i32_1 = arith.constant 0 : i32
    return %c0_i32, %c0_i32_0 : i32, i32
  }
  func.func @transform_5(%arg0: i32, %arg1: i32) -> (i32, i32) {
    %c0_i32 = arith.constant 0 : i32
    %c0_i32_0 = arith.constant 0 : i32
    %c0_i32_1 = arith.constant 0 : i32
    return %c0_i32, %c0_i32_0 : i32, i32
  }
  func.func @transform_6(%arg0: i32, %arg1: i32) -> (i32, i32) {
    %c0_i32 = arith.constant 0 : i32
    %c0_i32_0 = arith.constant 0 : i32
    %c0_i32_1 = arith.constant 0 : i32
    return %c0_i32, %c0_i32_0 : i32, i32
  }
  func.func @transform_7(%arg0: i32, %arg1: i32) -> (i32, i32) {
    %c0_i32 = arith.constant 0 : i32
    return %arg0, %arg1 : i32, i32
  }
}

</mosaic_0001>

<bundles_post_ra>
// kernel: tpu_custom_call.1
= control target key start
LH: loop header
LB: loop body
LE: loop exit
PB: predicated region body
PF: predicated region fallthrough
CT: control target
= control target key end

     0   :  { %12 = vsyncpa [#allocation3], 0  ;;  %s1435_s0 = inlined_call_operand.vmem [shape: f32[64,256], index: 0, kind: input, shape index: {}]   ;;  %s1436_s1 = inlined_call_operand.vmem [shape: f32[32,32], index: 1, kind: input, shape index: {}]   ;;  %s1437_s2 = inlined_call_operand.vmem [shape: f32[32,1], index: 2, kind: input, shape index: {}]   ;;  %s1438_s3 = inlined_call_operand.vmem [shape: f32[40,32], index: 3, kind: input, shape index: {}]   ;;  %s1439_s4 = inlined_call_operand.vmem [shape: f32[40,1], index: 4, kind: input, shape index: {}]   ;;  %s1440_s5 = inlined_call_operand.vmem [shape: f32[32,8], index: 5, kind: input, shape index: {}]   ;;  %s1441_s6 = inlined_call_operand.vmem [shape: f32[32,1], index: 6, kind: input, shape index: {}]   ;;  %s1442_s7 = inlined_call_operand.hbm [shape: f32[64,256], index: 7, kind: output, shape index: {}]  }
   0x1   :  { %14 = vsyncpa [#allocation3 + $0x1], 0  ;;  %s1162_s24 = smov 0   ;;  %s1164_s25 = smov 0  }
   0x2   :  { %s1166_s26 = smov 0   ;;  %s1168_s27 = smov 0  }
   0x3   :  { %s1170_s28 = smov 0   ;;  %s1172_s29 = smov 0  }
   0x4 LB: > { %s905_s30 = sadd.s32 4294967295, %s1115_s29   ;;  %s906_s8 = sadd.s32 4294967294, %s1115_s29   ;;  %s1115_s29 = sphi %s1172_s29, %s20_s29   ;;  %s1111_s28 = sphi %s1170_s28, %s1449_s28   ;;  %s1107_s27 = sphi %s1168_s27, %s1448_s27   ;;  %s1103_s26 = sphi %s1166_s26, %s1447_s26   ;;  %s1099_s25 = sphi %s1164_s25, %s1446_s25   ;;  %s1095_s24 = sphi %s1162_s24, %s1445_s24  }
   0x5   : > { %s32_s9 = sadd.s32 1, %s1111_s28  ;;  %s195_s10 = sadd.s32 1, %s1103_s26 }
   0x6   : > { %p34_p0 = scmp.ge.s32.totalorder %s32_s9, 2  ;;  %p205_p1 = scmp.ne.s32.totalorder %s1103_s26, %s1099_s25 }
   0x7   : > { %p206_p2 = scmp.eq.s32.totalorder %s905_s30, 1  ;;  %p211_p3 = scmp.ne.s32.totalorder %s1099_s25, %s1095_s24 }
   0x8   : > { %s1451_s9 = smov (%p34_p0, %s32_s9), 0  ;;  %p212_p5 = scmp.eq.s32.totalorder %s906_s8, 1 }
   0x9   : > { %p1202_p4 = por %p206_p2, %p205_p1  ;;  %s190_s12 = ssub.s32 %s1111_s28, %s1451_s9 }
   0xa   : > { %p909_p6 = scmp.ge.s32.totalorder %s1115_s29, 1  ;;  %p193_p7 = scmp.eq.s32.totalorder %s190_s12, 0 }
   0xb   : > { %p1209_p8 = por %p212_p5, %p211_p3  ;;  %p263_p9 = scmp.lt.s32.totalorder %s1115_s29, 3 }
   0xc   : > { %s1215_s14 = scalar_select %p193_p7, %s1103_s26, %s195_s10  }
   0xd   : > { %p264_p10 = pnand %p909_p6, %p263_p9 }
   0xe   : > { %s911_s15 = sshll.u32 (!%p264_p10), %s1107_s27, 2  ;;  %s297_s20 = sand.u32 (!%p264_p10), 1, %s1099_s25  }
   0xf   : > { %267 = sbr.rel (%p264_p10) target bundleno = 725 (0x2d5), region = 48  ;;  %p302_p11 = scmp.lt.s32.totalorder (!%p264_p10), %s911_s15, 7 }
  0x10   : > { %s910_s21 = sshll.u32 (!%p264_p10), %s297_s20, 6  ;;  %s943_s23 = sshll.u32 (!%p264_p10), %s1107_s27, 10 }
  0x11   : > { %s299_s22 = scalar_lea.vmem (!%p264_p10), [#allocation2], %s910_s21  ;;  %s1390_s27 = scalar_lea.sflag (!%p264_p10), [#allocation3], %s297_s20 }
  0x12   : > { %s1119_s17 = smov (!%p264_p10), [#allocation2]  }
  0x14   : > { %v1117_v0 = vmov 0.0   ;;  %v330_v1 = vld [vmem:[%s1437_s2 + $0x18] sm:$0xff]  ;;  %v1118_v2 = vmov 0   ;;  %v328_v3 = vld [vmem:[%s1437_s2 + $0x8] sm:$0xff]  ;;  %s1453_s15 = smov (!%p302_p11, %s911_s15), 7  ;;  %v329_v4 = vld [vmem:[%s1437_s2 + $0x10] sm:$0xff] }
  0x15   : > { %445 = vmatprep.mubr.f32.mxu0 %v1117_v0  ;;  %582 = vmatprep.mubr.f32.mxu1 %v1117_v0  ;;  %v327_v5 = vld [vmem:[%s1437_s2] sm:$0xff]  ;;  %s941_s30 = sshll.u32 %s1453_s15, 4  ;;  %v337_v16 = vld [vmem:[%s1441_s6 + $0x8] sm:$0xff]  ;;  %vm368_vm0 = vcmask 261120   ;;  %v338_v18 = vld [vmem:[%s1441_s6 + $0x10] sm:$0xff]  ;;  %vm635_vm1 = vcmask 64512  }
  0x16   : > { %1005 = vset.pattern.permute.xlu0 %v1118_v2  ;;  %1006 = vset.pattern.permute.xlu1 %v1118_v2  ;;  %s309_s12 = scalar_lea.vmem %s1435_s0, %s941_s30  ;;  %v335_v10 = vld [vmem:[%s1439_s4 + $0x20] sm:$0xff]  ;;  %v339_v19 = vld [vmem:[%s1441_s6 + $0x18] sm:$0xff]  ;;  %v315_v20 = vld [vmem:[%s1436_s1 + $0x8] sm:$0xff]  ;;  %s826_s30 = sshll.u32 %s299_s22, 4  ;;  %s1385_s30 = int_to_ptr.vmem [resolvable:$true] %s826_s30 }
  0x17   : > { %365 = vperm.xlu0 %1005, %v330_v1   ;;  %355 = vperm.xlu1 %1006, %v328_v3   ;;  %v1235_v6 = vld [vmem:[%s309_s12 + $0x38] sm:$0xff]  ;;  %v1237_v7 = vld [vmem:[%s309_s12 + $0x30] sm:$0xff]  ;;  %v1239_v8 = vld [vmem:[%s309_s12 + $0x28] sm:$0xff]  ;;  %s1039_s16 = scalar_lea.vmem %s1385_s30, 1024  ;;  %s1043_s15 = sshll.u32 %s1119_s17, 4  ;;  %s1044_s15 = int_to_ptr.vmem [resolvable:$false] %s1043_s15 }
  0x18   : > { %405 = vmatprep.subr.mxu0 %v1235_v6  ;;  %v1242_v9 = vld [vmem:[%s309_s12 + $0x20] sm:$0xff]  ;;  %v1248_v11 = vld [vmem:[%s309_s12 + $0x18] sm:$0xff]  ;;  %v1254_v13 = vld [vmem:[%s309_s12 + $0x10] sm:$0xff]  ;;  %p1040_p12 = scmp.ne.s32.totalorder %s1385_s30, %s1039_s16  ;;  %s1045_s18 = scalar_lea.vmem %s1044_s15, 2048 }
  0x19   : > { %406 = vmatpush1.msra.mxu0 %v1237_v7  ;;  %v336_v12 = vld [vmem:[%s1441_s6] sm:$0xff]  ;;  %v1257_v14 = vld [vmem:[%s309_s12 + $0x8] sm:$0xff]  ;;  %v316_v23 = vld [vmem:[%s1436_s1 + $0x10] sm:$0xff]  ;;  %p1046_p1 = scmp.lt.s32.totalorder %s1385_s30, %s1044_s15  ;;  %p1047_p2 = scmp.lt.s32.totalorder %s1045_s18, %s1039_s16 }
  0x1a   : > { %407 = vmatprep.subr.mxu0 %v1239_v8  ;;  %v1260_v15 = vld [vmem:[%s309_s12] sm:$0xff]  ;;  %v332_v22 = vld [vmem:[%s1439_s4 + $0x8] sm:$0xff]  ;;  %v333_v24 = vld [vmem:[%s1439_s4 + $0x10] sm:$0xff]  ;;  %s1383_s12 = scalar_lea.hbm %s1442_s7, %s943_s23  ;;  %p1041_p13 = pnand %p1040_p12, %p1202_p4 }
  0x1b   : > { %360 = vperm.xlu0 %1005, %v329_v4   ;;  %350 = vperm.xlu1 %1006, %v327_v5   ;;  %v314_v17 = vld [vmem:[%s1436_s1] sm:$0xff]  ;;  %v334_v25 = vld [vmem:[%s1439_s4 + $0x18] sm:$0xff]  ;;  %v319_v56 = vld [vmem:[%s1438_s3 + $0x8] sm:$0xff]  ;;  %p1048_p3 = por %p1047_p2, %p1046_p1 }
  0x1c   : > { %408 = vmatpush1.msra.mxu0 %v1242_v9  ;;  %v331_v21 = vld [vmem:[%s1439_s4] sm:$0xff]  ;;  %v317_v26 = vld [vmem:[%s1436_s1 + $0x18] sm:$0xff]  ;;  %v320_v57 = vld [vmem:[%s1438_s3 + $0x10] sm:$0xff]  ;;  %p1042_p0 = pneg %p1041_p13 }
  0x1d   : > { %409 = vmatprep.subr.mxu0 %v1248_v11  ;;  %v318_v55 = vld [vmem:[%s1438_s3] sm:$0xff]  ;;  %v321_v58 = vld [vmem:[%s1438_s3 + $0x18] sm:$0xff] }
  0x1e   : > { %410 = vmatpush1.msra.mxu0 %v1254_v13  ;;  %v322_v59 = vld [vmem:[%s1438_s3 + $0x20] sm:$0xff]  ;;  %p1049_p5 = pnand %p1048_p3, %p1042_p0 }
  0x1f   : > { %500 = vperm.xlu0 %1005, %v335_v10   ;;  %617 = vperm.xlu1 %1006, %v336_v12  }
  0x20   : > { %411 = vmatprep.subr.mxu0 %v1257_v14 }
  0x21   : > { %412 = vmatpush1.msra.mxu0 %v1260_v15 }
  0x22   : > { %914 = vmatmul.mubr.msk.f32.vlgmr.msra.gmra.mxu0 %vm368_vm0, %v314_v17 }
  0x23   : > { %622 = vperm.xlu0 %1005, %v337_v16   ;;  %627 = vperm.xlu1 %1006, %v338_v18  }
  0x24   : > { %451 = vmatprep.mubr.f32.mxu0 %v1117_v0 }
  0x26   : > { %915 = vmatmul.mubr.msk.f32.gmra.mxu0 %vm368_vm0, %v315_v20  ;;  %v323_v20 = vld [vmem:[%s1440_s5] sm:$0xff] }
  0x27   : > { %632 = vperm.xlu0 %1005, %v339_v19   ;;  %480 = vperm.xlu1 %1006, %v331_v21   ;;  %v326_v21 = vld [vmem:[%s1440_s5 + $0x18] sm:$0xff] }
  0x28   : > { %457 = vmatprep.mubr.f32.mxu0 %v1117_v0 }
  0x2a   : > { %916 = vmatmul.mubr.msk.f32.gmra.mxu0 %vm368_vm0, %v316_v23  ;;  %v325_v23 = vld [vmem:[%s1440_s5 + $0x10] sm:$0xff] }
  0x2b   : > { %485 = vperm.xlu0 %1005, %v332_v22   ;;  %490 = vperm.xlu1 %1006, %v333_v24   ;;  %v324_v22 = vld [vmem:[%s1440_s5 + $0x8] sm:$0xff] }
  0x2c   : > { %463 = vmatprep.mubr.f32.mxu0 %v1117_v0 }
  0x2e   : > { %917 = vmatmul.mubr.msk.f32.gmra.mxu0 %vm368_vm0, %v317_v26 }
  0x2f   : > { %495 = vperm.xlu0 %1005, %v334_v25   ;;  %712 = vmatprep.mubr.f32.mxu0 %v1117_v0 }
  0x92   : > { %v366_v31 = vpop.permute.xlu0 %365  ;;  %v356_v34 = vpop.permute.xlu1 %355 }
  0x96   : > { %v361_v36 = vpop.permute.xlu0 %360  ;;  %v351_v42 = vpop.permute.xlu1 %350 }
  0x9a   : > { %v501_v10 = vpop.permute.xlu0 %500  ;;  %v618_v26 = vpop.permute.xlu1 %617 }
  0x9e   : > { %v623_v24 = vpop.permute.xlu0 %622 }
  0xa2   : > { %v633_v25 = vpop.permute.xlu0 %632 }
  0xe2   : > { %v447_v27 = vpop.f32.mrf.mxu0 }
  0xe3   : > { %v448_v49 = vadd.f32 %v447_v27, %v351_v42 }
  0xe4   : > { %v449_v28 = vpop.f32.mrf.mxu0 }
  0xe5   : > { %v450_v47 = vadd.f32 %v449_v28, %v351_v42  ;;  %v470_v54 = vmax.f32 %v448_v49, 0.0 }
  0xe6   : > { %v453_v29 = vpop.f32.mrf.mxu0 }
  0xe7   : > { %v454_v45 = vadd.f32 %v453_v29, %v356_v34  ;;  %v471_v53 = vmax.f32 %v450_v47, 0.0 }
  0xe8   : > { %v455_v30 = vpop.f32.mrf.mxu0 }
  0xe9   : > { %v456_v43 = vadd.f32 %v455_v30, %v356_v34  ;;  %v472_v52 = vmax.f32 %v454_v45, 0.0 }
  0xea   : > { %v459_v32 = vpop.f32.mrf.mxu0 }
  0xeb   : > { %v460_v41 = vadd.f32 %v459_v32, %v361_v36  ;;  %v473_v51 = vmax.f32 %v456_v43, 0.0  ;;  %v628_v43 = vpop.permute.xlu1 %627 }
  0xec   : > { %v461_v33 = vpop.f32.mrf.mxu0 }
  0xed   : > { %v462_v39 = vadd.f32 %v461_v33, %v361_v36  ;;  %v474_v50 = vmax.f32 %v460_v41, 0.0 }
  0xee   : > { %v465_v35 = vpop.f32.mrf.mxu0 }
  0xef   : > { %v466_v37 = vadd.f32 %v465_v35, %v366_v31  ;;  %v475_v48 = vmax.f32 %v462_v39, 0.0 }
  0xf0   : > { %v467_v38 = vpop.f32.mrf.mxu0 }
  0xf1   : > { %v468_v40 = vadd.f32 %v467_v38, %v366_v31  ;;  %v476_v46 = vmax.f32 %v466_v37, 0.0 }
  0xf3   : > { %v477_v44 = vmax.f32 %v468_v40, 0.0 }
  0xf5   : > { %542 = vmatprep.subr.mxu1 %v477_v44 }
  0xf6   : > { %543 = vmatpush1.msra.mxu1 %v476_v46 }
  0xf7   : > { %544 = vmatprep.subr.mxu1 %v475_v48 }
  0xf8   : > { %545 = vmatpush1.msra.mxu1 %v474_v50 }
  0xf9   : > { %546 = vmatprep.subr.mxu1 %v473_v51 }
  0xfa   : > { %547 = vmatpush1.msra.mxu1 %v472_v52 }
  0xfb   : > { %548 = vmatprep.subr.mxu1 %v471_v53 }
  0xfc   : > { %549 = vmatpush1.msra.mxu1 %v470_v54 }
  0xfd   : > { %918 = vmatmul.mubr.msk.f32.vlgmr.msra.gmra.mxu1 %vm368_vm0, %v318_v55 }
  0xfe   : > { %588 = vmatprep.mubr.f32.mxu1 %v1117_v0 }
 0x101   : > { %919 = vmatmul.mubr.msk.f32.gmra.mxu1 %vm368_vm0, %v319_v56 }
 0x102   : > { %594 = vmatprep.mubr.f32.mxu1 %v1117_v0 }
 0x105   : > { %920 = vmatmul.mubr.msk.f32.gmra.mxu1 %vm368_vm0, %v320_v57 }
 0x106   : > { %600 = vmatprep.mubr.f32.mxu1 %v1117_v0 }
 0x109   : > { %921 = vmatmul.mubr.msk.f32.gmra.mxu1 %vm368_vm0, %v321_v58 }
 0x10a   : > { %606 = vmatprep.mubr.f32.mxu1 %v1117_v0 }
 0x10d   : > { %922 = vmatmul.mubr.msk.f32.gmra.mxu1 %vm368_vm0, %v322_v59 }
 0x10e   : > { %730 = vmatprep.mubr.f32.mxu1 %v1117_v0 }
 0x1bd   : > { %v1331_v60 = vpop.f32.mrf.mxu1 }
 0x1bf   : > { %v1333_v61 = vpop.f32.mrf.mxu1 }
 0x1c1   : > { %v1335_v62 = vpop.f32.mrf.mxu1 }
 0x1c3   : > { %v1337_v63 = vpop.f32.mrf.mxu1 }
 0x1c5   : > { %v1339_v1 = vpop.f32.mrf.mxu1 }
 0x1c7   : > { %v1341_v2 = vpop.f32.mrf.mxu1 }
 0x1c9   : > { %v1343_v3 = vpop.f32.mrf.mxu1 }
 0x1cb   : > { %v1345_v4 = vpop.f32.mrf.mxu1 }
 0x1cd   : > { %v608_v5 = vpop.f32.mrf.mxu1 }
 0x1ce   : > { %v609_v12 = vadd.f32 %v608_v5, %v501_v10 }
 0x1cf   : > { %v610_v16 = vpop.f32.mrf.mxu1 }
 0x1d0   : > { %v611_v17 = vadd.f32 %v610_v16, %v501_v10  ;;  %v613_v19 = vmax.f32 %v609_v12, 0.0 }
 0x1d2   : > { %v614_v18 = vmax.f32 %v611_v17, 0.0  ;;  %v486_v17 = vpop.permute.xlu0 %485 }
 0x1d4   : > { %678 = vmatprep.subr.mxu0 %v614_v18  ;;  %944 = vmatprep.subr.mxu1 %v614_v18 }
 0x1d5   : > { %679 = vmatpush1.msra.mxu0 %v613_v19  ;;  %945 = vmatpush1.msra.mxu1 %v613_v19 }
 0x1d6   : > { %923 = vmatmul.mubr.msk.f32.vlgmr.msra.gmra.mxu0 %vm635_vm1, %v323_v20  ;;  %926 = vmatmul.mubr.msk.f32.vlgmr.msra.gmra.mxu1 %vm635_vm1, %v326_v21  ;;  %v481_v21 = vpop.permute.xlu1 %480 }
 0x1d7   : > { %718 = vmatprep.mubr.f32.mxu0 %v1117_v0 }
 0x1da   : > { %924 = vmatmul.mubr.msk.f32.gmra.mxu0 %vm635_vm1, %v324_v22  ;;  %v496_v22 = vpop.permute.xlu0 %495 }
 0x1db   : > { %724 = vmatprep.mubr.f32.mxu0 %v1117_v0 }
 0x1de   : > { %925 = vmatmul.mubr.msk.f32.gmra.mxu0 %vm635_vm1, %v325_v23  ;;  %v585_v23 = vadd.f32 %v1331_v60, %v481_v21 }
 0x296   : > { %v714_v27 = vpop.f32.mrf.mxu0  ;;  %v732_v28 = vpop.f32.mrf.mxu1 }
 0x297   : > { %v715_v29 = vadd.f32 %v714_v27, %v618_v26  ;;  %v733_v30 = vadd.f32 %v732_v28, %v633_v25  ;;  %v587_v27 = vadd.f32 %v1333_v61, %v481_v21 }
 0x298   : > { %v716_v31 = vpop.f32.mrf.mxu0  ;;  %v734_v32 = vpop.f32.mrf.mxu1 }
 0x299   : > { %v927_v33 = vmul.f32 -1.442695, %v715_v29  ;;  %v933_v34 = vmul.f32 -1.442695, %v733_v30  ;;  %v717_v35 = vadd.f32 %v716_v31, %v618_v26  ;;  %v735_v36 = vadd.f32 %v734_v32, %v633_v25 }
 0x29a   : > { %v720_v37 = vpop.f32.mrf.mxu0  ;;  %v603_v25 = vadd.f32 %v1343_v3, %v496_v22  ;;  %v605_v30 = vadd.f32 %v1345_v4, %v496_v22  ;;  %v593_v3 = vadd.f32 %v1337_v63, %v486_v17 }
 0x29b   : > { %1007 = vpow2.f32 %v927_v33  ;;  %v928_v0 = vmul.f32 -1.442695, %v717_v35  ;;  %v934_v38 = vmul.f32 -1.442695, %v735_v36  ;;  %v721_v39 = vadd.f32 %v720_v37, %v623_v24 }
 0x29c   : > { %1009 = vpow2.f32 %v933_v34  ;;  %v722_v40 = vpop.f32.mrf.mxu0  ;;  %v591_v33 = vadd.f32 %v1335_v62, %v486_v17 }
 0x29d   : > { %1011 = vpow2.f32 %v928_v0  ;;  %v929_v41 = vmul.f32 -1.442695, %v721_v39  ;;  %v723_v42 = vadd.f32 %v722_v40, %v623_v24 }
 0x29e   : > { %1013 = vpow2.f32 %v934_v38  ;;  %v726_v44 = vpop.f32.mrf.mxu0  ;;  %v491_v38 = vpop.permute.xlu1 %490 }
 0x29f   : > { %1015 = vpow2.f32 %v929_v41  ;;  %v930_v45 = vmul.f32 -1.442695, %v723_v42  ;;  %v727_v46 = vadd.f32 %v726_v44, %v628_v43  ;;  %v599_v63 = vadd.f32 %v1341_v2, %v491_v38 }
 0x2a0   : > { %v728_v47 = vpop.f32.mrf.mxu0 }
 0x2a1   : > { %1017 = vpow2.f32 %v930_v45  ;;  %v931_v48 = vmul.f32 -1.442695, %v727_v46  ;;  %v729_v49 = vadd.f32 %v728_v47, %v628_v43 }
 0x2a3   : > { %1019 = vpow2.f32 %v931_v48  ;;  %v932_v50 = vmul.f32 -1.442695, %v729_v49 }
 0x2a5   : > { %1021 = vpow2.f32 %v932_v50 }
 0x2a8   : > { %v1008_v51 = vpop.eup %1007 }
 0x2a9   : > { %v1010_v52 = vpop.eup %1009  ;;  %v761_v53 = vadd.f32 1.0, %v1008_v51 }
 0x2aa   : > { %v1012_v54 = vpop.eup %1011  ;;  %v767_v55 = vadd.f32 1.0, %v1010_v52 }
 0x2ab   : > { %v1014_v56 = vpop.eup %1013  ;;  %1023 = vrcp.f32 %v761_v53  ;;  %v762_v57 = vadd.f32 1.0, %v1012_v54 }
 0x2ac   : > { %v1016_v58 = vpop.eup %1015  ;;  %1025 = vrcp.f32 %v767_v55  ;;  %v768_v59 = vadd.f32 1.0, %v1014_v56 }
 0x2ad   : > { %1027 = vrcp.f32 %v762_v57  ;;  %v763_v5 = vadd.f32 1.0, %v1016_v58 }
 0x2ae   : > { %v1018_v10 = vpop.eup %1017  ;;  %1029 = vrcp.f32 %v768_v59 }
 0x2af   : > { %1031 = vrcp.f32 %v763_v5  ;;  %v764_v12 = vadd.f32 1.0, %v1018_v10 }
 0x2b0   : > { %v1020_v16 = vpop.eup %1019 }
 0x2b1   : > { %1033 = vrcp.f32 %v764_v12  ;;  %v765_v18 = vadd.f32 1.0, %v1020_v16 }
 0x2b2   : > { %v1022_v19 = vpop.eup %1021 }
 0x2b3   : > { %1035 = vrcp.f32 %v765_v18  ;;  %v766_v20 = vadd.f32 1.0, %v1022_v19 }
 0x2b5   : > { %1037 = vrcp.f32 %v766_v20 }
 0x2b8   : > { %v1024_v24 = vpop.eup %1023 }
 0x2b9   : > { %v1026_v26 = vpop.eup %1025  ;;  %v785_v28 = vmul.f32 %v1024_v24, %v585_v23 }
 0x2ba   : > { %v1028_v29 = vpop.eup %1027  ;;  %v791_v31 = vmul.f32 %v1026_v26, %v603_v25 }
 0x2bb   : > { %v1030_v32 = vpop.eup %1029  ;;  %v793_v34 = vadd.f32 %v785_v28, %v1260_v15  ;;  %v786_v35 = vmul.f32 %v1028_v29, %v587_v27  ;;  %v597_v15 = vadd.f32 %v1339_v1, %v491_v38 }
 0x2bc   : > { %v1032_v60 = vpop.eup %1031  ;;  %v799_v36 = vadd.f32 %v791_v31, %v1237_v7  ;;  %v792_v37 = vmul.f32 %v1030_v32, %v605_v30 }
 0x2bd   : > { %801 = vst [vmem:[%s299_s22] sm:$0xff] %v793_v34  ;;  %v794_v61 = vadd.f32 %v786_v35, %v1257_v14  ;;  %v787_v0 = vmul.f32 %v1032_v60, %v591_v33 }
 0x2be   : > { %v1034_v4 = vpop.eup %1033  ;;  %807 = vst [vmem:[%s299_s22 + $0x30] sm:$0xff] %v799_v36  ;;  %v800_v62 = vadd.f32 %v792_v37, %v1235_v6 }
 0x2bf   : > { %802 = vst [vmem:[%s299_s22 + $0x8] sm:$0xff] %v794_v61  ;;  %v795_v39 = vadd.f32 %v787_v0, %v1254_v13  ;;  %v788_v7 = vmul.f32 %v1034_v4, %v593_v3 }
 0x2c0   : > { %v1036_v40 = vpop.eup %1035  ;;  %808 = vst [vmem:[%s299_s22 + $0x38] sm:$0xff] %v800_v62 }
 0x2c1   : > { %803 = vst [vmem:[%s299_s22 + $0x10] sm:$0xff] %v795_v39  ;;  %v796_v14 = vadd.f32 %v788_v7, %v1248_v11  ;;  %v789_v41 = vmul.f32 %v1036_v40, %v597_v15 }
 0x2c2   : > { %v1038_v42 = vpop.eup %1037 }
 0x2c3   : > { %804 = vst [vmem:[%s299_s22 + $0x18] sm:$0xff] %v796_v14  ;;  %v797_v6 = vadd.f32 %v789_v41, %v1242_v9  ;;  %v790_v1 = vmul.f32 %v1038_v42, %v599_v63 }
 0x2c5   : > { %805 = vst [vmem:[%s299_s22 + $0x20] sm:$0xff] %v797_v6  ;;  %v798_v11 = vadd.f32 %v790_v1, %v1239_v8 }
 0x2c7   : > { %806 = vst [vmem:[%s299_s22 + $0x28] sm:$0xff] %v798_v11 }
 0x2c8   : > { %1052 = shalt.err (!%p1049_p5)
}
 0x2c9   : > { %s1053_s19 = scalar_lea.hbm %s1383_s12, 1024  ;;  %s1057_s22 = scalar_lea.hbm %s1442_s7, 2048 }
 0x2ca   : > { %p1054_p6 = scmp.ne.s32.totalorder %s1383_s12, %s1053_s19  ;;  %p1058_p10 = scmp.lt.s32.totalorder %s1383_s12, %s1442_s7 }
 0x2cb   : > { %p1059_p11 = scmp.lt.s32.totalorder %s1057_s22, %s1053_s19 }
 0x2cc   : > { %p1055_p7 = pnand %p1054_p6, %p1202_p4 }
 0x2cd   : > { %p1060_p12 = por %p1059_p11, %p1058_p10 }
 0x2ce   : > { %p1056_p9 = pneg %p1055_p7 }
 0x2d0   : > { %p1061_p13 = pnand %p1060_p12, %p1056_p9 }
 0x2d2   : > { %1064 = shalt.err (!%p1061_p13)
}
 0x2d3   : > { %s1120_s10 = smov 256   ;;  %s1121_s16 = smov 16  }
 0x2d4   : > { %946 = dma.vmem_to_hbm [thread:$0]  (%p1202_p4), %s1385_s30, 1024, %s1383_s12, %s1390_s27, %s1120_s10, %s1120_s10, %s1121_s16  }
 0x2d5 PF: > { %p952_p0 = scmp.ge.s32.totalorder %s1115_s29, 2  ;;  %s841_s17 = sand.u32 1, %s1095_s24  }
 0x2d6   : > { %s842_s15 = scalar_lea.sflag [#allocation3], %s841_s17 }
 0x2d7   : > { %p949_p1 = pnand %p952_p0, %p1209_p8 }
 0x2d9   : > { %p950_p2 = pneg %p949_p1 }
 0x2db   : > { %1090 = dma.done.wait (%p950_p2), %s842_s15, 1024  }
 0x2dc   : > { %1092 = vsyncadd (%p950_p2), %s842_s15, 4294966272  ;;  %s20_s29 = sadd.s32 1, %s1115_s29   ;;  %s1445_s24 = smov %s1099_s25 }
 0x2dd   : > { %p17_p3 = scmp.ge.s32.totalorder %s20_s29, 4   ;;  %s1446_s25 = smov %s1103_s26 }
 0x2de   : > { %s1447_s26 = smov %s1215_s14  ;;  %s1448_s27 = smov %s1111_s28 }
 0x2df   : > { %s1449_s28 = smov %s1451_s9  ;;  %19 = sbr.rel (!%p17_p3) target bundleno = 4 (0x4), region = 83 }
 0x2e4   :  { %847 = vsyncpa [#allocation3], 1 }
 0x2e5   :  { %849 = vsyncpa [#allocation3 + $0x1], 1 }

</bundles_post_ra>
